<compile_context>
chip_gen: v7x
topology: tpu7x:2x2x1
jax: 0.10.0
libtpu: 0.0.40
codegen_flags: <defaults>
</compile_context>

<pallas_src>
import jax
import jax.numpy as jnp
from jax.experimental import pallas as pl
from jax.experimental.pallas import tpu as pltpu


def _matmul_bias_kernel(a_ref, b_ref, bias_ref, o_ref):
    """o = a @ b + bias for one M-tile; K and N are single full tiles."""
    a = a_ref[...]
    b = b_ref[...]
    acc = jnp.dot(a.astype(b.dtype), b, preferred_element_type=jnp.float32)
    o_ref[...] = (acc + bias_ref[...]).astype(o_ref.dtype)


def matmul_bias(a, b, bias, *, tm_max=512, out_dtype=jnp.float32):
    """Pallas TPU matmul: (M, K) @ (K, N) + (N,) -> (M, N).

    K and N are kept as single full-extent blocks (weight/bias stay VMEM-resident
    across the whole M stream); only the M axis is tiled and pipelined.
    """
    M, K = a.shape
    K2, N = b.shape
    assert K == K2 and bias.shape == (N,)

    if M <= tm_max:
        tm = M                      # single block == full dim (always legal)
    else:
        tm = tm_max                 # multiple of 8 -> ragged last block is legal
        assert tm % 8 == 0
    grid_m = pl.cdiv(M, tm)

    bias2d = bias.astype(jnp.float32).reshape(1, N)

    return pl.pallas_call(
        _matmul_bias_kernel,
        out_shape=jax.ShapeDtypeStruct((M, N), out_dtype),
        grid_spec=pltpu.PrefetchScalarGridSpec(
            num_scalar_prefetch=0,
            grid=(grid_m,),
            in_specs=[
                pl.BlockSpec((tm, K), lambda i: (i, 0)),   # activations: streamed
                pl.BlockSpec((K, N), lambda i: (0, 0)),    # weight: grid-invariant
                pl.BlockSpec((1, N), lambda i: (0, 0)),    # bias:   grid-invariant
            ],
            out_specs=pl.BlockSpec((tm, N), lambda i: (i, 0)),
        ),
        compiler_params=pltpu.CompilerParams(
            dimension_semantics=("parallel",)),
    )(a, b, bias2d)


class PatchEmbed:
    """JAX/Pallas mirror of the PyTorch PatchEmbed module (default Identity norm)."""

    def __init__(self, patch_size=4, in_c=204, embed_dim=96, norm_layer=None,
                 *, operand_dtype=jnp.bfloat16, key=None):
        self.patch_size = (patch_size, patch_size)
        self.in_chans = in_c
        self.embed_dim = embed_dim
        self.operand_dtype = operand_dtype
        # TODO(synk): non-default norm_layer (e.g. LayerNorm) not implemented; this
        # mirrors the default norm_layer=None (nn.Identity) path only.
        assert norm_layer is None

        if key is None:
            key = jax.random.PRNGKey(0)
        k_w, k_b = jax.random.split(key)
        # Conv2d(in_c, embed_dim, kernel=stride=patch_size) parameters, OIHW layout,
        # PyTorch-style uniform(-1/sqrt(fan_in), 1/sqrt(fan_in)) init.
        fan_in = in_c * patch_size * patch_size
        bound = 1.0 / (fan_in ** 0.5)
        self.weight = jax.random.uniform(
            k_w, (embed_dim, in_c, patch_size, patch_size),
            minval=-bound, maxval=bound, dtype=jnp.float32)
        self.bias = jax.random.uniform(
            k_b, (embed_dim,), minval=-bound, maxval=bound, dtype=jnp.float32)

        # Precompute the matmul weight once (K ordered as (pw, C) so the activation
        # side is a pure reshape):  wmat[j*C + c, o] = weight[o, c, 0, j].
        # Only kernel row 0 contributes (the H padding rows only meet zeros).
        self.wmat = (self.weight[:, :, 0, :]            # (O, C, pw)
                     .transpose(2, 1, 0)                # (pw, C, O)
                     .reshape(patch_size * in_c, embed_dim)
                     .astype(operand_dtype))            # (K, N), tiny -> free

    def __call__(self, x):
        # x: (B, L, in_c).  unsqueeze(1)+permute(0,3,1,2) => NCHW image (B, in_c, 1, L).
        assert x.ndim == 3 and x.shape[-1] == self.in_chans
        ph, pw = self.patch_size
        B, L, C = x.shape
        H = 1  # conv-input height after unsqueeze

        # Faithful F.pad semantics: pad is applied iff (H%ph or W%pw) != 0, and the
        # W pad amount is then pw - L%pw (a FULL extra zero patch when L%pw == 0).
        pad_input = (H % ph != 0) or (L % pw != 0)
        pad_w = (pw - L % pw) if pad_input else 0

        # Cast fuses with the pad (single HBM pass) and halves the streamed A bytes.
        x = x.astype(self.operand_dtype)
        if pad_w:
            x = jnp.pad(x, ((0, 0), (0, pad_w), (0, 0)))
        Lp = L + pad_w
        Ho, Wo = 1, Lp // pw

        # Patchify: pure reshape (zero-copy view), no transpose.
        #   patches[b*Wo + w, j*C + c] = x[b, w*pw + j, c]
        patches = x.reshape(B * Wo, pw * C)

        out = matmul_bias(patches, self.wmat, self.bias,
                          out_dtype=jnp.float32)        # (B*Wo, embed_dim)
        out = out.reshape(B, Ho * Wo, self.embed_dim)
        return out, Ho, Wo


if __name__ == "__main__":
    root = jax.random.PRNGKey(0)
    k_x, k_params = jax.random.split(root)

    # Small shapes consistent with the forward: x is (batch, seq, in_c).
    B, L, in_c, embed_dim, p = 2, 16, 8, 32, 4
    x = jax.random.normal(k_x, (B, L, in_c), dtype=jnp.float32)

    module = PatchEmbed(patch_size=p, in_c=in_c, embed_dim=embed_dim, key=k_params)
    out, Ho, Wo = module(x)
    out = jax.block_until_ready(out)
    assert out.shape == (B, Ho * Wo, embed_dim), out.shape

    # Reference: the faithful unsqueeze/permute/F.pad/conv/flatten/transpose path
    # (f32 weights, HIGHEST precision).
    img = jnp.transpose(x, (0, 2, 1))[:, :, None, :]            # (B, C, 1, L)
    Hc, Wc = img.shape[2], img.shape[3]
    if Hc % p != 0 or Wc % p != 0:
        img = jnp.pad(img, ((0, 0), (0, 0),
                            (0, p - Hc % p), (0, p - Wc % p)))
    ref = jax.lax.conv_general_dilated(
        img, module.weight, window_strides=(p, p), padding="VALID",
        dimension_numbers=("NCHW", "OIHW", "NCHW"),
        precision=jax.lax.Precision.HIGHEST)
    ref = ref + module.bias[None, :, None, None]
    _, _, Hr, Wr = ref.shape
    assert (Hr, Wr) == (Ho, Wo), ((Hr, Wr), (Ho, Wo))
    ref = ref.reshape(B, embed_dim, Hr * Wr).transpose(0, 2, 1)

    max_err = float(jnp.max(jnp.abs(out - ref)))
    assert jnp.allclose(out, ref, atol=2e-2, rtol=2e-2), max_err

    print("KERNEL_OK")
</pallas_src>

<mosaic_0001>
module attributes {stable_mosaic.version = 11 : i64} {
  func.func @_matmul_bias_kernel(%arg0: i32, %arg1: memref<10x32xbf16, #tpu.memory_space<vmem>>, %arg2: memref<32x32xbf16, #tpu.memory_space<vmem>>, %arg3: memref<1x32xf32, #tpu.memory_space<vmem>>, %arg4: memref<10x32xf32, #tpu.memory_space<vmem>>) attributes {dimension_semantics = [#tpu.dimension_semantics<parallel>], iteration_bounds = array<i64: 1>, scalar_prefetch = 0 : i64, scratch_operands = 0 : i64, tpu.core_type = #tpu.core_type<tc>, window_params = [{transform_indices = @transform_0, window_bounds = array<i64: 10, 32>}, {pipeline_mode = #tpu.pipeline_mode<synchronous>, transform_indices = @transform_1, window_bounds = array<i64: 32, 32>}, {pipeline_mode = #tpu.pipeline_mode<synchronous>, transform_indices = @transform_2, window_bounds = array<i64: 1, 32>}, {transform_indices = @transform_3, window_bounds = array<i64: 10, 32>}]} {
    %c0 = arith.constant 0 : index
    %c0_0 = arith.constant 0 : index
    %0 = vector.load %arg1[%c0, %c0_0] : memref<10x32xbf16, #tpu.memory_space<vmem>>, vector<10x32xbf16>
    %c0_1 = arith.constant 0 : index
    %c0_2 = arith.constant 0 : index
    %1 = vector.load %arg2[%c0_1, %c0_2] : memref<32x32xbf16, #tpu.memory_space<vmem>>, vector<32x32xbf16>
    %cst = arith.constant dense<0.000000e+00> : vector<10x32xf32>
    %2 = tpu.matmul %0, %1, %cst {dimension_numbers = #tpu.dot_dimension_numbers<[1], [0], [0], [1], [0, 0, 1, 1], [], []>} : vector<10x32xbf16>, vector<32x32xbf16>, vector<10x32xf32> -> vector<10x32xf32>
    %c0_3 = arith.constant 0 : index
    %c0_4 = arith.constant 0 : index
    %3 = vector.load %arg3[%c0_3, %c0_4] : memref<1x32xf32, #tpu.memory_space<vmem>>, vector<1x32xf32>
    %4 = vector.broadcast %3 : vector<1x32xf32> to vector<10x32xf32>
    %5 = arith.addf %2, %4 : vector<10x32xf32>
    %c0_5 = arith.constant 0 : index
    %c0_6 = arith.constant 0 : index
    %6 = vector.load %arg4[%c0_5, %c0_6] : memref<10x32xf32, #tpu.memory_space<vmem>>, vector<10x32xf32>
    tpu.vector_store %arg4[%c0_5, %c0_6], %5 {strides = array<i32>} : memref<10x32xf32, #tpu.memory_space<vmem>>, vector<10x32xf32>,
    return
  }
  func.func @transform_0(%arg0: i32) -> (i32, i32) {
    %c0_i32 = arith.constant 0 : i32
    %c0_i32_0 = arith.constant 0 : i32
    return %arg0, %c0_i32 : i32, i32
  }
  func.func @transform_1(%arg0: i32) -> (i32, i32) {
    %c0_i32 = arith.constant 0 : i32
    %c0_i32_0 = arith.constant 0 : i32
    %c0_i32_1 = arith.constant 0 : i32
    return %c0_i32, %c0_i32_0 : i32, i32
  }
  func.func @transform_2(%arg0: i32) -> (i32, i32) {
    %c0_i32 = arith.constant 0 : i32
    %c0_i32_0 = arith.constant 0 : i32
    %c0_i32_1 = arith.constant 0 : i32
    return %c0_i32, %c0_i32_0 : i32, i32
  }
  func.func @transform_3(%arg0: i32) -> (i32, i32) {
    %c0_i32 = arith.constant 0 : i32
    %c0_i32_0 = arith.constant 0 : i32
    return %arg0, %c0_i32 : i32, i32
  }
}

</mosaic_0001>

<bundles_post_ra>
// kernel: tpu_custom_call.1
= control target key start
LH: loop header
LB: loop body
LE: loop exit
PB: predicated region body
PF: predicated region fallthrough
CT: control target
= control target key end

     0   :  { %8 = vsyncpa [#allocation3], 0  ;;  %s308_s0 = inlined_call_operand.hbm [shape: bf16[10,32], index: 0, kind: input, shape index: {}]   ;;  %s309_s1 = inlined_call_operand.hbm [shape: bf16[32,32], index: 1, kind: input, shape index: {}]   ;;  %s310_s2 = inlined_call_operand.vmem [shape: f32[1,32], index: 2, kind: input, shape index: {}]   ;;  %s311_s3 = inlined_call_operand.hbm [shape: f32[10,32], index: 3, kind: output, shape index: {}]  }
   0x1   :  { %9 = vsyncpa [#allocation6], 0 }
   0x2   :  { %10 = vsyncpa [#allocation4], 0  ;;  %s240_s12 = smov [#allocation2]   ;;  %s168_s16 = scalar_lea.hbm %s308_s0, 128 }
   0x3   :  { %s16_s13 = sshll.u32 %s240_s12, 4  ;;  %p169_p0 = scmp.ne.s32.totalorder %s308_s0, %s168_s16  ;;  %s17_s13 = int_to_ptr.vmem [resolvable:$true] %s16_s13 }
   0x4   :  { %p172_p1 = scmp.lt.u32.totalorder %s168_s16, %s308_s0 }
   0x6   :  { %p174_p2 = pnand %p172_p1, %p169_p0 }
   0x8   :  { %177 = shalt.err (!%p174_p2)
}
   0x9   :  { %s178_s21 = scalar_lea.vmem %s17_s13, 128  ;;  %p183_p4 = scmp.lt.s32.totalorder %s17_s13, %s17_s13 }
   0xa   :  { %p179_p3 = scmp.ne.s32.totalorder %s17_s13, %s178_s21  ;;  %p184_p5 = scmp.lt.s32.totalorder %s178_s21, %s178_s21 }
   0xc   :  { %p185_p6 = por %p184_p5, %p183_p4 }
   0xe   :  { %p186_p7 = pnand %p185_p6, %p179_p3 }
  0x10   :  { %189 = shalt.err (!%p186_p7)
}
  0x11   :  { %s241_s22 = smov 64   ;;  %s242_s23 = smov 4  }
  0x12   :  { %22 = dma.hbm_to_vmem [thread:$0]  %s308_s0, 128, %s17_s13, [#allocation3], %s241_s22, %s241_s22, %s242_s23  }
  0x13   :  { %s243_s26 = smov [#allocation5]   ;;  %s190_s30 = scalar_lea.hbm %s309_s1, 256 }
  0x14   :  { %s28_s27 = sshll.u32 %s243_s26, 4  ;;  %p191_p8 = scmp.ne.s32.totalorder %s309_s1, %s190_s30  ;;  %s29_s27 = int_to_ptr.vmem [resolvable:$true] %s28_s27 }
  0x15   :  { %p194_p9 = scmp.lt.u32.totalorder %s190_s30, %s309_s1 }
  0x17   :  { %p196_p10 = pnand %p194_p9, %p191_p8 }
  0x19   :  { %199 = shalt.err (!%p196_p10)
}
  0x1a   :  { %s200_s8 = scalar_lea.vmem %s29_s27, 256  ;;  %p205_p12 = scmp.lt.s32.totalorder %s29_s27, %s29_s27 }
  0x1b   :  { %p201_p11 = scmp.ne.s32.totalorder %s29_s27, %s200_s8  ;;  %p206_p13 = scmp.lt.s32.totalorder %s200_s8, %s200_s8 }
  0x1d   :  { %p207_p0 = por %p206_p13, %p205_p12 }
  0x1f   :  { %p208_p1 = pnand %p207_p0, %p201_p11 }
  0x21   :  { %211 = shalt.err (!%p208_p1)
}
  0x22   :  { %34 = dma.hbm_to_vmem [thread:$0]  %s309_s1, 256, %s29_s27, [#allocation6], %s241_s22, %s241_s22, %s242_s23  }
  0x23   :  { %234 = dma.done.wait [#allocation3], 128  }
  0x24   :  { %235 = vsyncadd [#allocation3], 4294967168 }
  0x25   :  { %236 = dma.done.wait [#allocation6], 256  }
  0x26   :  { %237 = vsyncadd [#allocation6], 4294967040  ;;  %v244_v0 = vmov 0.0   ;;  %vm245_vm0 = vmmov 0   ;;  %v165_v1 = vld [vmem:[#allocation5] sm:$0xff]   ;;  %v166_v2 = vld [vmem:[#allocation5 + $0x8] sm:$0xff]  }
  0x27   :  { %148 = vmatprep.subr.bf16.mxu0 %v244_v0  ;;  %152 = vmatprep.mubr.msk.bf16.mxu0 %vm245_vm0, %v244_v0  ;;  %v167_v3 = vld [vmem:[#allocation2] sm:$0x1f]   ;;  %vm74_vm1 = vcmask 261120   ;;  %s246_s1 = smov [#allocation7]   ;;  %vm120_vm2 = vcmask 254976  }
  0x28   :  { %149 = vmatpush3.bf16.msra.mxu0 %v165_v1  ;;  %v140_v4 = vld [vmem:[%s310_s2] ss:$0 sm:$0xff]  ;;  %s127_s12 = sshll.u32 %s246_s1, 4  ;;  %s128_s12 = int_to_ptr.vmem [resolvable:$true] %s127_s12 }
  0x29   :  { %150 = vmatprep.subr.bf16.mxu0 %v244_v0  ;;  %s212_s13 = scalar_lea.vmem %s128_s12, 256  ;;  %p217_p3 = scmp.lt.s32.totalorder %s128_s12, %s128_s12 }
  0x2a   :  { %p213_p2 = scmp.ne.s32.totalorder %s128_s12, %s212_s13  ;;  %p218_p4 = scmp.lt.s32.totalorder %s212_s13, %s212_s13 }
  0x2c   :  { %151 = vmatpush3.bf16.msra.mxu0 %v166_v2  ;;  %p219_p5 = por %p218_p4, %p217_p3 }
  0x2e   :  { %p220_p6 = pnand %p219_p5, %p213_p2 }
  0x2f   :  { %153 = vmatmul.mubr.msk.bf16.vlgmr.msra.gmra.mrb[0].mxu0 %vm74_vm1, %v167_v3 }
 0x102   :  { %v112_v5 = vpop.f32.mrb[0].mxu0 }
 0x103   :  { %v113_v6 = vadd.f32 %v140_v4, %v112_v5  ;;  %v154_v7 = vpop.f32.mrb[1].mxu0 }
 0x104   :  { %v115_v8 = vpop.f32.mrb[2].mxu0 }
 0x105   :  { %119 = vst.msk [vmem:[#allocation7] sm:$0xff] %vm74_vm1, %v113_v6  ;;  %v116_v9 = vadd.f32 %v140_v4, %v115_v8  ;;  %v155_v10 = vpop.f32.mrb[3].mxu0 }
 0x107   :  { %121 = vst.msk [vmem:[#allocation7 + $0x8] sm:$0x3] %vm120_vm2, %v116_v9 }
 0x108   :  { %223 = shalt.err (!%p220_p6)
}
 0x109   :  { %s224_s15 = scalar_lea.hbm %s311_s3, 256 }
 0x10a   :  { %p225_p7 = scmp.ne.s32.totalorder %s311_s3, %s224_s15  ;;  %p228_p8 = scmp.lt.u32.totalorder %s224_s15, %s311_s3 }
 0x10c   :  { %p230_p9 = pnand %p228_p8, %p225_p7 }
 0x10e   :  { %233 = shalt.err (!%p230_p9)
}
 0x10f   :  { %s247_s20 = smov 128   ;;  %s248_s21 = smov 8  }
 0x110   :  { %133 = dma.vmem_to_hbm [thread:$0]  %s128_s12, 256, %s311_s3, [#allocation4], %s247_s20, %s247_s20, %s248_s21  }
 0x111   :  { %238 = dma.done.wait [#allocation4], 256  }
 0x112   :  { %239 = vsyncadd [#allocation4], 4294967040 }
 0x113   :  { %137 = vsyncpa [#allocation3], 1 }
 0x114   :  { %138 = vsyncpa [#allocation6], 1 }
 0x115   :  { %139 = vsyncpa [#allocation4], 1 }

</bundles_post_ra>
